<compile_context>
chip_gen: v7x
topology: tpu7x:2x2x1
jax: 0.10.0
libtpu: 0.0.40
codegen_flags: <defaults>
</compile_context>

<pallas_src>
import functools

import jax
import jax.numpy as jnp
from jax.experimental import pallas as pl
from jax.experimental.pallas import tpu as pltpu


def _round_up(x, m):
    return (x + m - 1) // m * m


def _crf_forward_kernel(len_ref, em_ref, et_ref, c_ref, eos_ref, out_ref,
                        alpha_ref, *, time_block):
    # len_ref:   (TB, 1)      int32    sequence lengths (clamped to [1, L])
    # em_ref:    (TL, TB, T)  float32  emission chunk, time-major; BOS folded into t==0
    # et_ref:    (T, T)       float32  Et[k, j] = exp(trans[j, k] - c[j])
    # c_ref:     (1, T)       float32  c[j] = max_k trans[j, k]
    # eos_ref:   (1, T)       float32  transitions[EOS, :]
    # out_ref:   (TB, 1)      float32  per-example log-partition (written on last chunk)
    # alpha_ref: (TB, T)      float32  VMEM scratch, carried across the time grid axis
    tb = pl.program_id(1)
    n_tb = pl.num_programs(1)

    lengths = len_ref[...]            # (TB, 1) int32
    et = et_ref[...]                  # (T, T)
    c_row = c_ref[...]                # (1, T)

    def recurrence(feat, t_glob):
        alpha = alpha_ref[...]                                    # (TB, T)
        m_b = jnp.max(alpha, axis=1, keepdims=True)               # (TB, 1)
        p = jnp.exp(alpha - m_b)                                  # (TB, T), in (0, 1]
        s = jnp.dot(p, et, preferred_element_type=jnp.float32)    # (TB, T) on the MXU
        new_alpha = feat + c_row + m_b + jnp.log(s)
        # Freeze rows whose sequence has already ended (t >= length); also makes
        # zero-padded time steps a no-op.
        alpha_ref[...] = jnp.where(t_glob < lengths, new_alpha, alpha)

    for dt in range(time_block):      # static, fully unrolled
        feat = em_ref[dt]             # (TB, T)
        t_glob = tb * time_block + dt
        if dt == 0:
            @pl.when(tb == 0)
            def _init():
                # alpha_0 = transitions[:, BOS] + emission[:, 0, :]  (BOS folded in wrapper)
                alpha_ref[...] = feat

            @pl.when(tb > 0)
            def _step():
                recurrence(feat, t_glob)
        else:
            recurrence(feat, t_glob)

    @pl.when(tb == n_tb - 1)
    def _finalize():
        fin = alpha_ref[...] + eos_ref[...]                        # (TB, T)
        m = jnp.max(fin, axis=1, keepdims=True)                    # (TB, 1)
        out_ref[...] = jnp.log(jnp.sum(jnp.exp(fin - m), axis=1, keepdims=True)) + m


def crf_forward(emission, emission_length, transitions, *, bos, eos):
    """LSTMCRF.forward: emission (B, L, T) f32, emission_length (B,), transitions (T, T)."""
    B, L, T = emission.shape
    assert transitions.shape == (T, T)

    trans = transitions.astype(jnp.float32)
    em = emission.astype(jnp.float32)

    # Static prep (XLA glue): fold BOS column into the first emission slice and
    # precompute the stabilized exp-space transition matrix + its row maxima.
    em = em.at[:, 0, :].add(trans[:, bos][None, :])
    c = jnp.max(trans, axis=1, keepdims=True)              # (T, 1)
    et = jnp.exp(trans - c).T                              # (T, T); Et[k, j] = exp(tr[j,k]-c[j])
    c_row = c.reshape(1, T)
    eos_row = trans[eos, :].reshape(1, T)

    # Clamp lengths into [1, L] (reference would index alphas[l-1]; valid inputs only).
    lengths = jnp.clip(emission_length.astype(jnp.int32), 1, L)

    # Tiling: batch on sublanes (TB per tile), tags on lanes, time streamed in TL-step
    # chunks (unrolled inside the kernel).
    TB = min(_round_up(B, 8), 128)
    Bp = _round_up(B, TB)
    TL = min(L, 8)
    Lp = _round_up(L, TL)
    nb, ntl = Bp // TB, Lp // TL

    em_tm = jnp.transpose(em, (1, 0, 2))                   # (L, B, T) time-major
    em_tm = jnp.pad(em_tm, ((0, Lp - L), (0, Bp - B), (0, 0)))
    len_col = jnp.pad(lengths, (0, Bp - B), constant_values=1).reshape(Bp, 1)

    kernel = functools.partial(_crf_forward_kernel, time_block=TL)
    out = pl.pallas_call(
        kernel,
        out_shape=jax.ShapeDtypeStruct((Bp, 1), jnp.float32),
        grid_spec=pltpu.PrefetchScalarGridSpec(
            num_scalar_prefetch=0,
            grid=(nb, ntl),
            in_specs=[
                pl.BlockSpec((TB, 1), lambda b, t: (b, 0)),         # lengths
                pl.BlockSpec((TL, TB, T), lambda b, t: (t, b, 0)),  # emission chunk
                pl.BlockSpec((T, T), lambda b, t: (0, 0)),          # Et (exp-space trans^T)
                pl.BlockSpec((1, T), lambda b, t: (0, 0)),          # per-row max c
                pl.BlockSpec((1, T), lambda b, t: (0, 0)),          # transitions[EOS, :]
            ],
            out_specs=pl.BlockSpec((TB, 1), lambda b, t: (b, 0)),
            scratch_shapes=[pltpu.VMEM((TB, T), jnp.float32)],      # carried alpha
        ),
        compiler_params=pltpu.CompilerParams(
            dimension_semantics=("parallel", "arbitrary"),
            vmem_limit_bytes=32 * 1024 * 1024,
        ),
    )(len_col, em_tm, et, c_row, eos_row)

    # Sum of per-example log-partitions over the *real* batch (padded rows dropped),
    # matching `sum(real_alphas)` in the PyTorch module.
    return jnp.sum(out[:B, 0])


def crf_forward_ref(emission, emission_length, transitions, *, bos, eos):
    """Pure-JAX reference mirroring the PyTorch loop exactly."""
    B, L, T = emission.shape
    alpha = transitions[:, bos][None, :] + emission[:, 0, :]
    alphas = [alpha]
    for i in range(1, L):
        feat = emission[:, i, :]
        add_3 = feat[:, :, None] + transitions[None, :, :] + alpha[:, None, :]
        alpha = jax.scipy.special.logsumexp(add_3, axis=2)
        alphas.append(alpha)
    total = jnp.float32(0.0)
    for b in range(B):
        l = int(emission_length[b])
        total = total + jax.scipy.special.logsumexp(alphas[l - 1][b] + transitions[eos, :])
    return total


if __name__ == "__main__":
    # Small deterministic setup consistent with the module:
    #   num_tags = 8 (BOS = 6, EOS = 7), batch = 2, max_length = 8.
    key = jax.random.PRNGKey(0)
    B, L, T = 2, 8, 8
    BOS, EOS = T - 2, T - 1

    k1, k2 = jax.random.split(key)
    # transition_initial, with the same __init__-time overrides as the module:
    transitions = jax.random.normal(k1, (T, T), dtype=jnp.float32)
    transitions = transitions.at[BOS, :].set(-1000.0)   # transitions[BOS, :] = -1000
    transitions = transitions.at[:, EOS].set(-1000.0)   # transitions[:, EOS] = -1000

    # emission as produced by the LSTM encoder (here synthetic), shape (B, L, T)
    emission = jax.random.normal(k2, (B, L, T), dtype=jnp.float32)
    emission_length = jnp.array([L, L - 3], dtype=jnp.int32)

    out = crf_forward(emission, emission_length, transitions, bos=BOS, eos=EOS)
    out = jax.block_until_ready(out)

    ref = crf_forward_ref(emission, emission_length, transitions, bos=BOS, eos=EOS)
    # Tolerance allows for MXU f32 matmul pass decomposition at default precision.
    assert jnp.allclose(out, ref, rtol=2e-3, atol=2e-2), (float(out), float(ref))

    # TODO(synk): LSTMEncoder (embedding / LSTM / linear) and Viterbi decode are not
    # on the LSTMCRF.forward path and are not implemented here.
    print("KERNEL_OK")
</pallas_src>

<mosaic_0001>
module attributes {stable_mosaic.version = 11 : i64} {
  func.func @_crf_forward_kernel(%arg0: i32, %arg1: i32, %arg2: memref<8x1xi32, #tpu.memory_space<vmem>>, %arg3: memref<8x8x8xf32, #tpu.memory_space<vmem>>, %arg4: memref<8x8xf32, #tpu.memory_space<vmem>>, %arg5: memref<1x8xf32, #tpu.memory_space<vmem>>, %arg6: memref<1x8xf32, #tpu.memory_space<vmem>>, %arg7: memref<8x1xf32, #tpu.memory_space<vmem>>, %arg8: memref<8x8xf32, #tpu.memory_space<vmem>>) attributes {dimension_semantics = [#tpu.dimension_semantics<parallel>, #tpu.dimension_semantics<arbitrary>], iteration_bounds = array<i64: 1, 1>, scalar_prefetch = 0 : i64, scratch_operands = 1 : i64, tpu.core_type = #tpu.core_type<tc>, window_params = [{transform_indices = @transform_0, window_bounds = array<i64: 8, 1>}, {transform_indices = @transform_1, window_bounds = array<i64: 8, 8, 8>}, {pipeline_mode = #tpu.pipeline_mode<synchronous>, transform_indices = @transform_2, window_bounds = array<i64: 8, 8>}, {pipeline_mode = #tpu.pipeline_mode<synchronous>, transform_indices = @transform_3, window_bounds = array<i64: 1, 8>}, {pipeline_mode = #tpu.pipeline_mode<synchronous>, transform_indices = @transform_4, window_bounds = array<i64: 1, 8>}, {transform_indices = @transform_5, window_bounds = array<i64: 8, 1>}]} {
    %c0 = arith.constant 0 : index
    %c0_0 = arith.constant 0 : index
    %0 = vector.load %arg2[%c0, %c0_0] : memref<8x1xi32, #tpu.memory_space<vmem>>, vector<8x1xi32>
    %c0_1 = arith.constant 0 : index
    %c0_2 = arith.constant 0 : index
    %1 = vector.load %arg4[%c0_1, %c0_2] : memref<8x8xf32, #tpu.memory_space<vmem>>, vector<8x8xf32>
    %c0_3 = arith.constant 0 : index
    %c0_4 = arith.constant 0 : index
    %2 = vector.load %arg5[%c0_3, %c0_4] : memref<1x8xf32, #tpu.memory_space<vmem>>, vector<1x8xf32>
    %c0_5 = arith.constant 0 : index
    %c0_6 = arith.constant 0 : index
    %c0_7 = arith.constant 0 : index
    %3 = vector.load %arg3[%c0_5, %c0_6, %c0_7] : memref<8x8x8xf32, #tpu.memory_space<vmem>>, vector<1x8x8xf32>
    %4 = vector.shape_cast %3 : vector<1x8x8xf32> to vector<8x8xf32>
    %c8_i32 = arith.constant 8 : i32
    %5 = arith.muli %arg1, %c8_i32 : i32
    %c0_i32 = arith.constant 0 : i32
    %6 = arith.addi %5, %c0_i32 : i32
    %c0_i32_8 = arith.constant 0 : i32
    %7 = arith.cmpi eq, %arg1, %c0_i32_8 : i32
    %8 = arith.extui %7 : i1 to i32
    %c0_i32_9 = arith.constant 0 : i32
    %9 = arith.cmpi ne, %8, %c0_i32_9 : i32
    scf.if %9 {
      %c0_76 = arith.constant 0 : index
      %c0_77 = arith.constant 0 : index
      %177 = vector.load %arg8[%c0_76, %c0_77] : memref<8x8xf32, #tpu.memory_space<vmem>>, vector<8x8xf32>
      tpu.vector_store %arg8[%c0_76, %c0_77], %4 {strides = array<i32>} : memref<8x8xf32, #tpu.memory_space<vmem>>, vector<8x8xf32>,
    } else {
    }
    %c0_i32_10 = arith.constant 0 : i32
    %10 = arith.cmpi sgt, %arg1, %c0_i32_10 : i32
    %11 = arith.extui %10 : i1 to i32
    %c0_i32_11 = arith.constant 0 : i32
    %12 = arith.cmpi ne, %11, %c0_i32_11 : i32
    scf.if %12 {
      %c0_76 = arith.constant 0 : index
      %c0_77 = arith.constant 0 : index
      %177 = vector.load %arg8[%c0_76, %c0_77] : memref<8x8xf32, #tpu.memory_space<vmem>>, vector<8x8xf32>
      %cst_78 = arith.constant dense<0xFF800000> : vector<8xf32>
      %178 = vector.multi_reduction <maximumf>, %177, %cst_78 [1] : vector<8x8xf32> to vector<8xf32>
      %179 = vector.shape_cast %178 : vector<8xf32> to vector<8x1xf32>
      %180 = vector.broadcast %179 : vector<8x1xf32> to vector<8x8xf32>
      %181 = arith.subf %177, %180 : vector<8x8xf32>
      %182 = math.exp %181 : vector<8x8xf32>
      %cst_79 = arith.constant dense<0.000000e+00> : vector<8x8xf32>
      %183 = tpu.matmul %182, %1, %cst_79 {dimension_numbers = #tpu.dot_dimension_numbers<[1], [0], [0], [1], [0, 0, 1, 1], [], []>} : vector<8x8xf32>, vector<8x8xf32>, vector<8x8xf32> -> vector<8x8xf32>
      %184 = vector.broadcast %2 : vector<1x8xf32> to vector<8x8xf32>
      %185 = arith.addf %4, %184 : vector<8x8xf32>
      %186 = vector.broadcast %179 : vector<8x1xf32> to vector<8x8xf32>
      %187 = arith.addf %185, %186 : vector<8x8xf32>
      %188 = math.log %183 : vector<8x8xf32>
      %189 = arith.addf %187, %188 : vector<8x8xf32>
      %190 = vector.broadcast %6 : i32 to vector<8x1xi32>
      %191 = arith.cmpi slt, %190, %0 : vector<8x1xi32>
      %192 = vector.shape_cast %191 : vector<8x1xi1> to vector<8x1xi1>
      %193 = vector.broadcast %192 : vector<8x1xi1> to vector<8x8xi1>
      %194 = arith.select %193, %189, %177 : vector<8x8xi1>, vector<8x8xf32>
      %c0_80 = arith.constant 0 : index
      %c0_81 = arith.constant 0 : index
      %195 = vector.load %arg8[%c0_80, %c0_81] : memref<8x8xf32, #tpu.memory_space<vmem>>, vector<8x8xf32>
      tpu.vector_store %arg8[%c0_80, %c0_81], %194 {strides = array<i32>} : memref<8x8xf32, #tpu.memory_space<vmem>>, vector<8x8xf32>,
    } else {
    }
    %c1 = arith.constant 1 : index
    %c0_12 = arith.constant 0 : index
    %c0_13 = arith.constant 0 : index
    %13 = vector.load %arg3[%c1, %c0_12, %c0_13] : memref<8x8x8xf32, #tpu.memory_space<vmem>>, vector<1x8x8xf32>
    %14 = vector.shape_cast %13 : vector<1x8x8xf32> to vector<8x8xf32>
    %c8_i32_14 = arith.constant 8 : i32
    %15 = arith.muli %arg1, %c8_i32_14 : i32
    %c1_i32 = arith.constant 1 : i32
    %16 = arith.addi %15, %c1_i32 : i32
    %c0_15 = arith.constant 0 : index
    %c0_16 = arith.constant 0 : index
    %17 = vector.load %arg8[%c0_15, %c0_16] : memref<8x8xf32, #tpu.memory_space<vmem>>, vector<8x8xf32>
    %cst = arith.constant dense<0xFF800000> : vector<8xf32>
    %18 = vector.multi_reduction <maximumf>, %17, %cst [1] : vector<8x8xf32> to vector<8xf32>
    %19 = vector.shape_cast %18 : vector<8xf32> to vector<8x1xf32>
    %20 = vector.broadcast %19 : vector<8x1xf32> to vector<8x8xf32>
    %21 = arith.subf %17, %20 : vector<8x8xf32>
    %22 = math.exp %21 : vector<8x8xf32>
    %cst_17 = arith.constant dense<0.000000e+00> : vector<8x8xf32>
    %23 = tpu.matmul %22, %1, %cst_17 {dimension_numbers = #tpu.dot_dimension_numbers<[1], [0], [0], [1], [0, 0, 1, 1], [], []>} : vector<8x8xf32>, vector<8x8xf32>, vector<8x8xf32> -> vector<8x8xf32>
    %24 = vector.broadcast %2 : vector<1x8xf32> to vector<8x8xf32>
    %25 = arith.addf %14, %24 : vector<8x8xf32>
    %26 = vector.broadcast %19 : vector<8x1xf32> to vector<8x8xf32>
    %27 = arith.addf %25, %26 : vector<8x8xf32>
    %28 = math.log %23 : vector<8x8xf32>
    %29 = arith.addf %27, %28 : vector<8x8xf32>
    %30 = vector.broadcast %16 : i32 to vector<8x1xi32>
    %31 = arith.cmpi slt, %30, %0 : vector<8x1xi32>
    %32 = vector.shape_cast %31 : vector<8x1xi1> to vector<8x1xi1>
    %33 = vector.broadcast %32 : vector<8x1xi1> to vector<8x8xi1>
    %34 = arith.select %33, %29, %17 : vector<8x8xi1>, vector<8x8xf32>
    %c0_18 = arith.constant 0 : index
    %c0_19 = arith.constant 0 : index
    %35 = vector.load %arg8[%c0_18, %c0_19] : memref<8x8xf32, #tpu.memory_space<vmem>>, vector<8x8xf32>
    tpu.vector_store %arg8[%c0_18, %c0_19], %34 {strides = array<i32>} : memref<8x8xf32, #tpu.memory_space<vmem>>, vector<8x8xf32>,
    %c2 = arith.constant 2 : index
    %c0_20 = arith.constant 0 : index
    %c0_21 = arith.constant 0 : index
    %36 = vector.load %arg3[%c2, %c0_20, %c0_21] : memref<8x8x8xf32, #tpu.memory_space<vmem>>, vector<1x8x8xf32>
    %37 = vector.shape_cast %36 : vector<1x8x8xf32> to vector<8x8xf32>
    %c8_i32_22 = arith.constant 8 : i32
    %38 = arith.muli %arg1, %c8_i32_22 : i32
    %c2_i32 = arith.constant 2 : i32
    %39 = arith.addi %38, %c2_i32 : i32
    %c0_23 = arith.constant 0 : index
    %c0_24 = arith.constant 0 : index
    %40 = vector.load %arg8[%c0_23, %c0_24] : memref<8x8xf32, #tpu.memory_space<vmem>>, vector<8x8xf32>
    %cst_25 = arith.constant dense<0xFF800000> : vector<8xf32>
    %41 = vector.multi_reduction <maximumf>, %40, %cst_25 [1] : vector<8x8xf32> to vector<8xf32>
    %42 = vector.shape_cast %41 : vector<8xf32> to vector<8x1xf32>
    %43 = vector.broadcast %42 : vector<8x1xf32> to vector<8x8xf32>
    %44 = arith.subf %40, %43 : vector<8x8xf32>
    %45 = math.exp %44 : vector<8x8xf32>
    %cst_26 = arith.constant dense<0.000000e+00> : vector<8x8xf32>
    %46 = tpu.matmul %45, %1, %cst_26 {dimension_numbers = #tpu.dot_dimension_numbers<[1], [0], [0], [1], [0, 0, 1, 1], [], []>} : vector<8x8xf32>, vector<8x8xf32>, vector<8x8xf32> -> vector<8x8xf32>
    %47 = vector.broadcast %2 : vector<1x8xf32> to vector<8x8xf32>
    %48 = arith.addf %37, %47 : vector<8x8xf32>
    %49 = vector.broadcast %42 : vector<8x1xf32> to vector<8x8xf32>
    %50 = arith.addf %48, %49 : vector<8x8xf32>
    %51 = math.log %46 : vector<8x8xf32>
    %52 = arith.addf %50, %51 : vector<8x8xf32>
    %53 = vector.broadcast %39 : i32 to vector<8x1xi32>
    %54 = arith.cmpi slt, %53, %0 : vector<8x1xi32>
    %55 = vector.shape_cast %54 : vector<8x1xi1> to vector<8x1xi1>
    %56 = vector.broadcast %55 : vector<8x1xi1> to vector<8x8xi1>
    %57 = arith.select %56, %52, %40 : vector<8x8xi1>, vector<8x8xf32>
    %c0_27 = arith.constant 0 : index
    %c0_28 = arith.constant 0 : index
    %58 = vector.load %arg8[%c0_27, %c0_28] : memref<8x8xf32, #tpu.memory_space<vmem>>, vector<8x8xf32>
    tpu.vector_store %arg8[%c0_27, %c0_28], %57 {strides = array<i32>} : memref<8x8xf32, #tpu.memory_space<vmem>>, vector<8x8xf32>,
    %c3 = arith.constant 3 : index
    %c0_29 = arith.constant 0 : index
    %c0_30 = arith.constant 0 : index
    %59 = vector.load %arg3[%c3, %c0_29, %c0_30] : memref<8x8x8xf32, #tpu.memory_space<vmem>>, vector<1x8x8xf32>
    %60 = vector.shape_cast %59 : vector<1x8x8xf32> to vector<8x8xf32>
    %c8_i32_31 = arith.constant 8 : i32
    %61 = arith.muli %arg1, %c8_i32_31 : i32
    %c3_i32 = arith.constant 3 : i32
    %62 = arith.addi %61, %c3_i32 : i32
    %c0_32 = arith.constant 0 : index
    %c0_33 = arith.constant 0 : index
    %63 = vector.load %arg8[%c0_32, %c0_33] : memref<8x8xf32, #tpu.memory_space<vmem>>, vector<8x8xf32>
    %cst_34 = arith.constant dense<0xFF800000> : vector<8xf32>
    %64 = vector.multi_reduction <maximumf>, %63, %cst_34 [1] : vector<8x8xf32> to vector<8xf32>
    %65 = vector.shape_cast %64 : vector<8xf32> to vector<8x1xf32>
    %66 = vector.broadcast %65 : vector<8x1xf32> to vector<8x8xf32>
    %67 = arith.subf %63, %66 : vector<8x8xf32>
    %68 = math.exp %67 : vector<8x8xf32>
    %cst_35 = arith.constant dense<0.000000e+00> : vector<8x8xf32>
    %69 = tpu.matmul %68, %1, %cst_35 {dimension_numbers = #tpu.dot_dimension_numbers<[1], [0], [0], [1], [0, 0, 1, 1], [], []>} : vector<8x8xf32>, vector<8x8xf32>, vector<8x8xf32> -> vector<8x8xf32>
    %70 = vector.broadcast %2 : vector<1x8xf32> to vector<8x8xf32>
    %71 = arith.addf %60, %70 : vector<8x8xf32>
    %72 = vector.broadcast %65 : vector<8x1xf32> to vector<8x8xf32>
    %73 = arith.addf %71, %72 : vector<8x8xf32>
    %74 = math.log %69 : vector<8x8xf32>
    %75 = arith.addf %73, %74 : vector<8x8xf32>
    %76 = vector.broadcast %62 : i32 to vector<8x1xi32>
    %77 = arith.cmpi slt, %76, %0 : vector<8x1xi32>
    %78 = vector.shape_cast %77 : vector<8x1xi1> to vector<8x1xi1>
    %79 = vector.broadcast %78 : vector<8x1xi1> to vector<8x8xi1>
    %80 = arith.select %79, %75, %63 : vector<8x8xi1>, vector<8x8xf32>
    %c0_36 = arith.constant 0 : index
    %c0_37 = arith.constant 0 : index
    %81 = vector.load %arg8[%c0_36, %c0_37] : memref<8x8xf32, #tpu.memory_space<vmem>>, vector<8x8xf32>
    tpu.vector_store %arg8[%c0_36, %c0_37], %80 {strides = array<i32>} : memref<8x8xf32, #tpu.memory_space<vmem>>, vector<8x8xf32>,
    %c4 = arith.constant 4 : index
    %c0_38 = arith.constant 0 : index
    %c0_39 = arith.constant 0 : index
    %82 = vector.load %arg3[%c4, %c0_38, %c0_39] : memref<8x8x8xf32, #tpu.memory_space<vmem>>, vector<1x8x8xf32>
    %83 = vector.shape_cast %82 : vector<1x8x8xf32> to vector<8x8xf32>
    %c8_i32_40 = arith.constant 8 : i32
    %84 = arith.muli %arg1, %c8_i32_40 : i32
    %c4_i32 = arith.constant 4 : i32
    %85 = arith.addi %84, %c4_i32 : i32
    %c0_41 = arith.constant 0 : index
    %c0_42 = arith.constant 0 : index
    %86 = vector.load %arg8[%c0_41, %c0_42] : memref<8x8xf32, #tpu.memory_space<vmem>>, vector<8x8xf32>
    %cst_43 = arith.constant dense<0xFF800000> : vector<8xf32>
    %87 = vector.multi_reduction <maximumf>, %86, %cst_43 [1] : vector<8x8xf32> to vector<8xf32>
    %88 = vector.shape_cast %87 : vector<8xf32> to vector<8x1xf32>
    %89 = vector.broadcast %88 : vector<8x1xf32> to vector<8x8xf32>
    %90 = arith.subf %86, %89 : vector<8x8xf32>
    %91 = math.exp %90 : vector<8x8xf32>
    %cst_44 = arith.constant dense<0.000000e+00> : vector<8x8xf32>
    %92 = tpu.matmul %91, %1, %cst_44 {dimension_numbers = #tpu.dot_dimension_numbers<[1], [0], [0], [1], [0, 0, 1, 1], [], []>} : vector<8x8xf32>, vector<8x8xf32>, vector<8x8xf32> -> vector<8x8xf32>
    %93 = vector.broadcast %2 : vector<1x8xf32> to vector<8x8xf32>
    %94 = arith.addf %83, %93 : vector<8x8xf32>
    %95 = vector.broadcast %88 : vector<8x1xf32> to vector<8x8xf32>
    %96 = arith.addf %94, %95 : vector<8x8xf32>
    %97 = math.log %92 : vector<8x8xf32>
    %98 = arith.addf %96, %97 : vector<8x8xf32>
    %99 = vector.broadcast %85 : i32 to vector<8x1xi32>
    %100 = arith.cmpi slt, %99, %0 : vector<8x1xi32>
    %101 = vector.shape_cast %100 : vector<8x1xi1> to vector<8x1xi1>
    %102 = vector.broadcast %101 : vector<8x1xi1> to vector<8x8xi1>
    %103 = arith.select %102, %98, %86 : vector<8x8xi1>, vector<8x8xf32>
    %c0_45 = arith.constant 0 : index
    %c0_46 = arith.constant 0 : index
    %104 = vector.load %arg8[%c0_45, %c0_46] : memref<8x8xf32, #tpu.memory_space<vmem>>, vector<8x8xf32>
    tpu.vector_store %arg8[%c0_45, %c0_46], %103 {strides = array<i32>} : memref<8x8xf32, #tpu.memory_space<vmem>>, vector<8x8xf32>,
    %c5 = arith.constant 5 : index
    %c0_47 = arith.constant 0 : index
    %c0_48 = arith.constant 0 : index
    %105 = vector.load %arg3[%c5, %c0_47, %c0_48] : memref<8x8x8xf32, #tpu.memory_space<vmem>>, vector<1x8x8xf32>
    %106 = vector.shape_cast %105 : vector<1x8x8xf32> to vector<8x8xf32>
    %c8_i32_49 = arith.constant 8 : i32
    %107 = arith.muli %arg1, %c8_i32_49 : i32
    %c5_i32 = arith.constant 5 : i32
    %108 = arith.addi %107, %c5_i32 : i32
    %c0_50 = arith.constant 0 : index
    %c0_51 = arith.constant 0 : index
    %109 = vector.load %arg8[%c0_50, %c0_51] : memref<8x8xf32, #tpu.memory_space<vmem>>, vector<8x8xf32>
    %cst_52 = arith.constant dense<0xFF800000> : vector<8xf32>
    %110 = vector.multi_reduction <maximumf>, %109, %cst_52 [1] : vector<8x8xf32> to vector<8xf32>
    %111 = vector.shape_cast %110 : vector<8xf32> to vector<8x1xf32>
    %112 = vector.broadcast %111 : vector<8x1xf32> to vector<8x8xf32>
    %113 = arith.subf %109, %112 : vector<8x8xf32>
    %114 = math.exp %113 : vector<8x8xf32>
    %cst_53 = arith.constant dense<0.000000e+00> : vector<8x8xf32>
    %115 = tpu.matmul %114, %1, %cst_53 {dimension_numbers = #tpu.dot_dimension_numbers<[1], [0], [0], [1], [0, 0, 1, 1], [], []>} : vector<8x8xf32>, vector<8x8xf32>, vector<8x8xf32> -> vector<8x8xf32>
    %116 = vector.broadcast %2 : vector<1x8xf32> to vector<8x8xf32>
    %117 = arith.addf %106, %116 : vector<8x8xf32>
    %118 = vector.broadcast %111 : vector<8x1xf32> to vector<8x8xf32>
    %119 = arith.addf %117, %118 : vector<8x8xf32>
    %120 = math.log %115 : vector<8x8xf32>
    %121 = arith.addf %119, %120 : vector<8x8xf32>
    %122 = vector.broadcast %108 : i32 to vector<8x1xi32>
    %123 = arith.cmpi slt, %122, %0 : vector<8x1xi32>
    %124 = vector.shape_cast %123 : vector<8x1xi1> to vector<8x1xi1>
    %125 = vector.broadcast %124 : vector<8x1xi1> to vector<8x8xi1>
    %126 = arith.select %125, %121, %109 : vector<8x8xi1>, vector<8x8xf32>
    %c0_54 = arith.constant 0 : index
    %c0_55 = arith.constant 0 : index
    %127 = vector.load %arg8[%c0_54, %c0_55] : memref<8x8xf32, #tpu.memory_space<vmem>>, vector<8x8xf32>
    tpu.vector_store %arg8[%c0_54, %c0_55], %126 {strides = array<i32>} : memref<8x8xf32, #tpu.memory_space<vmem>>, vector<8x8xf32>,
    %c6 = arith.constant 6 : index
    %c0_56 = arith.constant 0 : index
    %c0_57 = arith.constant 0 : index
    %128 = vector.load %arg3[%c6, %c0_56, %c0_57] : memref<8x8x8xf32, #tpu.memory_space<vmem>>, vector<1x8x8xf32>
    %129 = vector.shape_cast %128 : vector<1x8x8xf32> to vector<8x8xf32>
    %c8_i32_58 = arith.constant 8 : i32
    %130 = arith.muli %arg1, %c8_i32_58 : i32
    %c6_i32 = arith.constant 6 : i32
    %131 = arith.addi %130, %c6_i32 : i32
    %c0_59 = arith.constant 0 : index
    %c0_60 = arith.constant 0 : index
    %132 = vector.load %arg8[%c0_59, %c0_60] : memref<8x8xf32, #tpu.memory_space<vmem>>, vector<8x8xf32>
    %cst_61 = arith.constant dense<0xFF800000> : vector<8xf32>
    %133 = vector.multi_reduction <maximumf>, %132, %cst_61 [1] : vector<8x8xf32> to vector<8xf32>
    %134 = vector.shape_cast %133 : vector<8xf32> to vector<8x1xf32>
    %135 = vector.broadcast %134 : vector<8x1xf32> to vector<8x8xf32>
    %136 = arith.subf %132, %135 : vector<8x8xf32>
    %137 = math.exp %136 : vector<8x8xf32>
    %cst_62 = arith.constant dense<0.000000e+00> : vector<8x8xf32>
    %138 = tpu.matmul %137, %1, %cst_62 {dimension_numbers = #tpu.dot_dimension_numbers<[1], [0], [0], [1], [0, 0, 1, 1], [], []>} : vector<8x8xf32>, vector<8x8xf32>, vector<8x8xf32> -> vector<8x8xf32>
    %139 = vector.broadcast %2 : vector<1x8xf32> to vector<8x8xf32>
    %140 = arith.addf %129, %139 : vector<8x8xf32>
    %141 = vector.broadcast %134 : vector<8x1xf32> to vector<8x8xf32>
    %142 = arith.addf %140, %141 : vector<8x8xf32>
    %143 = math.log %138 : vector<8x8xf32>
    %144 = arith.addf %142, %143 : vector<8x8xf32>
    %145 = vector.broadcast %131 : i32 to vector<8x1xi32>
    %146 = arith.cmpi slt, %145, %0 : vector<8x1xi32>
    %147 = vector.shape_cast %146 : vector<8x1xi1> to vector<8x1xi1>
    %148 = vector.broadcast %147 : vector<8x1xi1> to vector<8x8xi1>
    %149 = arith.select %148, %144, %132 : vector<8x8xi1>, vector<8x8xf32>
    %c0_63 = arith.constant 0 : index
    %c0_64 = arith.constant 0 : index
    %150 = vector.load %arg8[%c0_63, %c0_64] : memref<8x8xf32, #tpu.memory_space<vmem>>, vector<8x8xf32>
    tpu.vector_store %arg8[%c0_63, %c0_64], %149 {strides = array<i32>} : memref<8x8xf32, #tpu.memory_space<vmem>>, vector<8x8xf32>,
    %c7 = arith.constant 7 : index
    %c0_65 = arith.constant 0 : index
    %c0_66 = arith.constant 0 : index
    %151 = vector.load %arg3[%c7, %c0_65, %c0_66] : memref<8x8x8xf32, #tpu.memory_space<vmem>>, vector<1x8x8xf32>
    %152 = vector.shape_cast %151 : vector<1x8x8xf32> to vector<8x8xf32>
    %c8_i32_67 = arith.constant 8 : i32
    %153 = arith.muli %arg1, %c8_i32_67 : i32
    %c7_i32 = arith.constant 7 : i32
    %154 = arith.addi %153, %c7_i32 : i32
    %c0_68 = arith.constant 0 : index
    %c0_69 = arith.constant 0 : index
    %155 = vector.load %arg8[%c0_68, %c0_69] : memref<8x8xf32, #tpu.memory_space<vmem>>, vector<8x8xf32>
    %cst_70 = arith.constant dense<0xFF800000> : vector<8xf32>
    %156 = vector.multi_reduction <maximumf>, %155, %cst_70 [1] : vector<8x8xf32> to vector<8xf32>
    %157 = vector.shape_cast %156 : vector<8xf32> to vector<8x1xf32>
    %158 = vector.broadcast %157 : vector<8x1xf32> to vector<8x8xf32>
    %159 = arith.subf %155, %158 : vector<8x8xf32>
    %160 = math.exp %159 : vector<8x8xf32>
    %cst_71 = arith.constant dense<0.000000e+00> : vector<8x8xf32>
    %161 = tpu.matmul %160, %1, %cst_71 {dimension_numbers = #tpu.dot_dimension_numbers<[1], [0], [0], [1], [0, 0, 1, 1], [], []>} : vector<8x8xf32>, vector<8x8xf32>, vector<8x8xf32> -> vector<8x8xf32>
    %162 = vector.broadcast %2 : vector<1x8xf32> to vector<8x8xf32>
    %163 = arith.addf %152, %162 : vector<8x8xf32>
    %164 = vector.broadcast %157 : vector<8x1xf32> to vector<8x8xf32>
    %165 = arith.addf %163, %164 : vector<8x8xf32>
    %166 = math.log %161 : vector<8x8xf32>
    %167 = arith.addf %165, %166 : vector<8x8xf32>
    %168 = vector.broadcast %154 : i32 to vector<8x1xi32>
    %169 = arith.cmpi slt, %168, %0 : vector<8x1xi32>
    %170 = vector.shape_cast %169 : vector<8x1xi1> to vector<8x1xi1>
    %171 = vector.broadcast %170 : vector<8x1xi1> to vector<8x8xi1>
    %172 = arith.select %171, %167, %155 : vector<8x8xi1>, vector<8x8xf32>
    %c0_72 = arith.constant 0 : index
    %c0_73 = arith.constant 0 : index
    %173 = vector.load %arg8[%c0_72, %c0_73] : memref<8x8xf32, #tpu.memory_space<vmem>>, vector<8x8xf32>
    tpu.vector_store %arg8[%c0_72, %c0_73], %172 {strides = array<i32>} : memref<8x8xf32, #tpu.memory_space<vmem>>, vector<8x8xf32>,
    %c0_i32_74 = arith.constant 0 : i32
    %174 = arith.cmpi eq, %arg1, %c0_i32_74 : i32
    %175 = arith.extui %174 : i1 to i32
    %c0_i32_75 = arith.constant 0 : i32
    %176 = arith.cmpi ne, %175, %c0_i32_75 : i32
    scf.if %176 {
      %c0_76 = arith.constant 0 : index
      %c0_77 = arith.constant 0 : index
      %177 = vector.load %arg8[%c0_76, %c0_77] : memref<8x8xf32, #tpu.memory_space<vmem>>, vector<8x8xf32>
      %c0_78 = arith.constant 0 : index
      %c0_79 = arith.constant 0 : index
      %178 = vector.load %arg6[%c0_78, %c0_79] : memref<1x8xf32, #tpu.memory_space<vmem>>, vector<1x8xf32>
      %179 = vector.broadcast %178 : vector<1x8xf32> to vector<8x8xf32>
      %180 = arith.addf %177, %179 : vector<8x8xf32>
      %cst_80 = arith.constant dense<0xFF800000> : vector<8xf32>
      %181 = vector.multi_reduction <maximumf>, %180, %cst_80 [1] : vector<8x8xf32> to vector<8xf32>
      %182 = vector.shape_cast %181 : vector<8xf32> to vector<8x1xf32>
      %183 = vector.broadcast %182 : vector<8x1xf32> to vector<8x8xf32>
      %184 = arith.subf %180, %183 : vector<8x8xf32>
      %185 = math.exp %184 : vector<8x8xf32>
      %cst_81 = arith.constant dense<0.000000e+00> : vector<8xf32>
      %186 = vector.multi_reduction <add>, %185, %cst_81 [1] : vector<8x8xf32> to vector<8xf32>
      %187 = vector.shape_cast %186 : vector<8xf32> to vector<8x1xf32>
      %188 = math.log %187 : vector<8x1xf32>
      %189 = arith.addf %188, %182 : vector<8x1xf32>
      %c0_82 = arith.constant 0 : index
      %c0_83 = arith.constant 0 : index
      %190 = vector.load %arg7[%c0_82, %c0_83] : memref<8x1xf32, #tpu.memory_space<vmem>>, vector<8x1xf32>
      tpu.vector_store %arg7[%c0_82, %c0_83], %189 {strides = array<i32>} : memref<8x1xf32, #tpu.memory_space<vmem>>, vector<8x1xf32>,
    } else {
    }
    return
  }
  func.func @transform_0(%arg0: i32, %arg1: i32) -> (i32, i32) {
    %c0_i32 = arith.constant 0 : i32
    %c0_i32_0 = arith.constant 0 : i32
    return %arg0, %c0_i32 : i32, i32
  }
  func.func @transform_1(%arg0: i32, %arg1: i32) -> (i32, i32, i32) {
    %c0_i32 = arith.constant 0 : i32
    %c0_i32_0 = arith.constant 0 : i32
    return %arg1, %arg0, %c0_i32 : i32, i32, i32
  }
  func.func @transform_2(%arg0: i32, %arg1: i32) -> (i32, i32) {
    %c0_i32 = arith.constant 0 : i32
    %c0_i32_0 = arith.constant 0 : i32
    %c0_i32_1 = arith.constant 0 : i32
    return %c0_i32, %c0_i32_0 : i32, i32
  }
  func.func @transform_3(%arg0: i32, %arg1: i32) -> (i32, i32) {
    %c0_i32 = arith.constant 0 : i32
    %c0_i32_0 = arith.constant 0 : i32
    %c0_i32_1 = arith.constant 0 : i32
    return %c0_i32, %c0_i32_0 : i32, i32
  }
  func.func @transform_4(%arg0: i32, %arg1: i32) -> (i32, i32) {
    %c0_i32 = arith.constant 0 : i32
    %c0_i32_0 = arith.constant 0 : i32
    %c0_i32_1 = arith.constant 0 : i32
    return %c0_i32, %c0_i32_0 : i32, i32
  }
  func.func @transform_5(%arg0: i32, %arg1: i32) -> (i32, i32) {
    %c0_i32 = arith.constant 0 : i32
    %c0_i32_0 = arith.constant 0 : i32
    return %arg0, %c0_i32 : i32, i32
  }
}

</mosaic_0001>

<bundles_post_ra>
// kernel: tpu_custom_call.1
= control target key start
LH: loop header
LB: loop body
LE: loop exit
PB: predicated region body
PF: predicated region fallthrough
CT: control target
= control target key end

     0   :  { %10 = vsyncpa [#allocation4], 0  ;;  %s998_s18 = smov [#allocation3]   ;;  %s1142_s0 = inlined_call_operand.vmem [shape: s32[8,1], index: 0, kind: input, shape index: {}]   ;;  %s1143_s1 = inlined_call_operand.hbm [shape: f32[8,8,8], index: 1, kind: input, shape index: {}]   ;;  %s1144_s2 = inlined_call_operand.vmem [shape: f32[8,8], index: 2, kind: input, shape index: {}]   ;;  %s1145_s3 = inlined_call_operand.vmem [shape: f32[1,8], index: 3, kind: input, shape index: {}]   ;;  %s1146_s4 = inlined_call_operand.vmem [shape: f32[1,8], index: 4, kind: input, shape index: {}]   ;;  %s1147_s5 = inlined_call_operand.vmem [shape: f32[8,1], index: 5, kind: output, shape index: {}]  }
   0x1   :  { %s18_s19 = sshll.u32 %s998_s18, 4  ;;  %s974_s22 = scalar_lea.hbm %s1143_s1, 1024  ;;  %s19_s19 = int_to_ptr.vmem [resolvable:$true] %s18_s19 }
   0x2   :  { %p975_p0 = scmp.ne.s32.totalorder %s1143_s1, %s974_s22  ;;  %p978_p1 = scmp.lt.u32.totalorder %s974_s22, %s1143_s1 }
   0x4   :  { %p980_p2 = pnand %p978_p1, %p975_p0 }
   0x6   :  { %983 = shalt.err (!%p980_p2)
}
   0x7   :  { %s984_s27 = scalar_lea.vmem %s19_s19, 1024  ;;  %p989_p4 = scmp.lt.s32.totalorder %s19_s19, %s19_s19 }
   0x8   :  { %p985_p3 = scmp.ne.s32.totalorder %s19_s19, %s984_s27  ;;  %p990_p5 = scmp.lt.s32.totalorder %s984_s27, %s984_s27 }
   0xa   :  { %p991_p6 = por %p990_p5, %p989_p4 }
   0xc   :  { %p992_p7 = pnand %p991_p6, %p985_p3 }
   0xe   :  { %995 = shalt.err (!%p992_p7)
}
   0xf   :  { %s999_s28 = smov 128   ;;  %s1000_s29 = smov 8  }
  0x10   :  { %24 = dma.hbm_to_vmem [thread:$0]  %s1143_s1, 1024, %s19_s19, [#allocation4], %s999_s28, %s999_s28, %s1000_s29  }
  0x11   :  { %996 = dma.done.wait [#allocation4], 1024  }
  0x12   :  { %997 = vsyncadd [#allocation4], 4294966272  ;;  %vm43_vm0 = vcmask 64512   ;;  %v37_v0 = vld [vmem:[#allocation3] sm:$0xff]  ;;  %v1051_v3 = vld [vmem:[%s1144_s2] sm:$0xff]  ;;  %v1001_v4 = vmov 0.0  }
  0x13   :  { %44 = vst.msk [vmem:[#allocation2] sm:$0xff] %vm43_vm0, %v37_v0  ;;  %899 = vmatprep.subr.mxu0 %v1001_v4  ;;  %vm1002_vm1 = vmmov 0   ;;  %904 = vmatprep.subr.mxu1 %v1001_v4  ;;  %v1066_v5 = vld [vmem:[%s1142_s0] sm:$0xff]  ;;  %v1003_v6 = vmov 0   ;;  %v151_v15 = vld [vmem:[#allocation3 + $0x8] sm:$0xff]  ;;  %v352_v50 = vld [vmem:[#allocation3 + $0x18] sm:$0xff] }
  0x14   :  { %901 = vmatprep.mubr.msk.f32.mxu0 %vm1002_vm1, %v1001_v4  ;;  %900 = vmatpush3.msra.mxu0 %v1051_v3  ;;  %vm870_vm2 = vcmp.gt.s32.totalorder %v1066_v5, 1  ;;  %vm874_vm3 = vcmp.gt.s32.totalorder %v1066_v5, 3  ;;  %v1082_v16 = vld [vmem:[%s1145_s3] ss:$0 sm:$0xff]  ;;  %vm872_vm5 = vcmp.gt.s32.totalorder %v1066_v5, 2  ;;  %vm876_vm7 = vcmp.gt.s32.totalorder %v1066_v5, 4 }
  0x15   :  { %905 = vmatpush3.msra.mxu1 %v1051_v3  ;;  %906 = vmatprep.mubr.msk.f32.mxu1 %vm1002_vm1, %v1001_v4  ;;  %v247_v7 = vsel %vm870_vm2, 1, %v1003_v6  ;;  %v441_v8 = vsel %vm874_vm3, 1, %v1003_v6  ;;  %v240_v17 = vadd.f32 %v1082_v16, %v151_v15  ;;  %v344_v26 = vsel %vm872_vm5, 1, %v1003_v6  ;;  %v255_v33 = vld [vmem:[#allocation3 + $0x10] sm:$0xff] }
  0x16   :  { %909 = vmatprep.subr.mxu0 %v1001_v4  ;;  %914 = vmatprep.subr.mxu1 %v1001_v4  ;;  %v337_v34 = vadd.f32 %v1082_v16, %v255_v33  ;;  %v538_v43 = vsel %vm876_vm7, 1, %v1003_v6  ;;  %v434_v51 = vadd.f32 %v1082_v16, %v352_v50  ;;  %vm878_vm9 = vcmp.gt.s32.totalorder %v1066_v5, 5 }
  0x17   :  { %940 = vset.pattern.permute.xlu0 %v1003_v6  ;;  %941 = vset.pattern.permute.xlu1 %v1003_v6  ;;  %v635_v60 = vsel %vm878_vm9, 1, %v1003_v6  ;;  %vm880_vm11 = vcmp.gt.s32.totalorder %v1066_v5, 6  ;;  %vm882_vm13 = vcmp.gt.s32.totalorder %v1066_v5, 7 }
  0x1a   :  { %v153_v1 = vld [vmem:[#allocation2] sm:$0xff] }
  0x1b   :  { %v155_v2 = vsel %vm43_vm0, %v153_v1, -inf }
  0x1c   :  { %156 = vmax.xlane.f32.xlu0 %v155_v2 }
  0x32   :  { %249 = vperm.xlu0 %940, %v247_v7   ;;  %v449_v7 = vld [vmem:[#allocation3 + $0x20] sm:$0xff] }
  0x36   :  { %443 = vperm.xlu0 %940, %v441_v8   ;;  %v531_v8 = vadd.f32 %v1082_v16, %v449_v7 }
  0xa9   :  { %v157_v9 = vpop.xlane.xlu0 %156 }
  0xaa   :  { %v158_v10 = vsub.f32 %v153_v1, %v157_v9  ;;  %v241_v19 = vadd.f32 %v240_v17, %v157_v9 }
  0xac   :  { %v159_v11 = vmul.f32 1.442695, %v158_v10 }
  0xae   :  { %942 = vpow2.f32 %v159_v11 }
  0xb1   :  { %v250_v21 = vpop.permute.xlu0 %249 }
  0xb2   :  { %vm251_vm4 = vcmp.eq.s32.totalorder %v250_v21, 1 }
  0xb5   :  { %v444_v53 = vpop.permute.xlu0 %443 }
  0xb6   :  { %vm445_vm8 = vcmp.eq.s32.totalorder %v444_v53, 1 }
  0xb8   :  { %v943_v12 = vpop.eup %942 }
  0xb9   :  { %902 = vmatmul.mubr.msk.f32.vlgmr.msra.gmra.mrb[0].mxu0 %vm43_vm0, %v943_v12 }
  0xba   :  { %910 = vmatpush3.msra.mxu0 %v1051_v3  ;;  %911 = vmatprep.mubr.msk.f32.mxu0 %vm1002_vm1, %v1001_v4 }
  0xbb   :  { %919 = vmatprep.subr.mxu0 %v1001_v4 }
 0x18c   :  { %v230_v13 = vpop.f32.mrb[0].mxu0 }
 0x18d   :  { %944 = vlog2.f32 %v230_v13  ;;  %v903_v14 = vpop.f32.mrb[1].mxu0 }
 0x197   :  { %v945_v18 = vpop.eup %944 }
 0x198   :  { %v243_v20 = vmul.f32 0.6931472, %v945_v18  ;;  %v732_v18 = vsel %vm880_vm11, 1, %v1003_v6 }
 0x19a   :  { %v244_v22 = vadd.f32 %v243_v20, %v241_v19 }
 0x19c   :  { %v252_v23 = vsel %vm251_vm4, %v244_v22, %v153_v1 }
 0x19d   :  { %253 = vst.msk [vmem:[#allocation2] sm:$0xff] %vm43_vm0, %v252_v23 }
 0x1a4   :  { %v257_v24 = vld [vmem:[#allocation2] sm:$0xff] }
 0x1a5   :  { %v258_v25 = vsel %vm43_vm0, %v257_v24, -inf }
 0x1a6   :  { %259 = vmax.xlane.f32.xlu1 %v258_v25  ;;  %v546_v25 = vld [vmem:[#allocation3 + $0x28] sm:$0xff] }
 0x1b7   :  { %346 = vperm.xlu1 %941, %v344_v26   ;;  %v628_v26 = vadd.f32 %v1082_v16, %v546_v25 }
 0x233   :  { %v260_v27 = vpop.xlane.xlu1 %259 }
 0x234   :  { %v261_v28 = vsub.f32 %v257_v24, %v260_v27  ;;  %v338_v37 = vadd.f32 %v337_v34, %v260_v27 }
 0x236   :  { %v262_v29 = vmul.f32 1.442695, %v261_v28 }
 0x237   :  { %v347_v35 = vpop.permute.xlu1 %346 }
 0x238   :  { %946 = vpow2.f32 %v262_v29  ;;  %vm348_vm6 = vcmp.eq.s32.totalorder %v347_v35, 1 }
 0x242   :  { %v947_v30 = vpop.eup %946 }
 0x243   :  { %907 = vmatmul.mubr.msk.f32.vlgmr.msra.gmra.mrb[0].mxu1 %vm43_vm0, %v947_v30 }
 0x244   :  { %915 = vmatpush3.msra.mxu1 %v1051_v3  ;;  %916 = vmatprep.mubr.msk.f32.mxu1 %vm1002_vm1, %v1001_v4 }
 0x245   :  { %924 = vmatprep.subr.mxu1 %v1001_v4 }
 0x316   :  { %v333_v31 = vpop.f32.mrb[0].mxu1 }
 0x317   :  { %948 = vlog2.f32 %v333_v31  ;;  %v908_v32 = vpop.f32.mrb[1].mxu1 }
 0x321   :  { %v949_v36 = vpop.eup %948 }
 0x322   :  { %v340_v38 = vmul.f32 0.6931472, %v949_v36 }
 0x324   :  { %v341_v39 = vadd.f32 %v340_v38, %v338_v37 }
 0x326   :  { %v349_v40 = vsel %vm348_vm6, %v341_v39, %v257_v24 }
 0x327   :  { %350 = vst.msk [vmem:[#allocation2] sm:$0xff] %vm43_vm0, %v349_v40  ;;  %v643_v40 = vld [vmem:[#allocation3 + $0x30] sm:$0xff] }
 0x32e   :  { %v354_v41 = vld [vmem:[#allocation2] sm:$0xff] }
 0x32f   :  { %v355_v42 = vsel %vm43_vm0, %v354_v41, -inf }
 0x330   :  { %356 = vmax.xlane.f32.xlu1 %v355_v42 }
 0x341   :  { %540 = vperm.xlu1 %941, %v538_v43  }
 0x3bd   :  { %v357_v44 = vpop.xlane.xlu1 %356 }
 0x3be   :  { %v358_v45 = vsub.f32 %v354_v41, %v357_v44  ;;  %v435_v54 = vadd.f32 %v434_v51, %v357_v44 }
 0x3c0   :  { %v359_v46 = vmul.f32 1.442695, %v358_v45 }
 0x3c1   :  { %v541_v10 = vpop.permute.xlu1 %540 }
 0x3c2   :  { %950 = vpow2.f32 %v359_v46  ;;  %vm542_vm10 = vcmp.eq.s32.totalorder %v541_v10, 1 }
 0x3cc   :  { %v951_v47 = vpop.eup %950 }
 0x3cd   :  { %912 = vmatmul.mubr.msk.f32.vlgmr.msra.gmra.mrb[2].mxu0 %vm43_vm0, %v951_v47 }
 0x3ce   :  { %920 = vmatpush3.msra.mxu0 %v1051_v3  ;;  %921 = vmatprep.mubr.msk.f32.mxu0 %vm1002_vm1, %v1001_v4 }
 0x3cf   :  { %929 = vmatprep.subr.mxu0 %v1001_v4 }
 0x4a0   :  { %v430_v48 = vpop.f32.mrb[2].mxu0 }
 0x4a1   :  { %952 = vlog2.f32 %v430_v48  ;;  %v913_v49 = vpop.f32.mrb[3].mxu0 }
 0x4ab   :  { %v953_v52 = vpop.eup %952 }
 0x4ac   :  { %v437_v55 = vmul.f32 0.6931472, %v953_v52 }
 0x4ae   :  { %v438_v56 = vadd.f32 %v437_v55, %v435_v54  ;;  %v740_v54 = vld [vmem:[#allocation3 + $0x38] sm:$0xff] }
 0x4af   :  { %v822_v55 = vadd.f32 %v1082_v16, %v740_v54 }
 0x4b0   :  { %v446_v57 = vsel %vm445_vm8, %v438_v56, %v354_v41  ;;  %v725_v41 = vadd.f32 %v1082_v16, %v643_v40 }
 0x4b1   :  { %447 = vst.msk [vmem:[#allocation2] sm:$0xff] %vm43_vm0, %v446_v57 }
 0x4b8   :  { %v451_v58 = vld [vmem:[#allocation2] sm:$0xff] }
 0x4b9   :  { %v452_v59 = vsel %vm43_vm0, %v451_v58, -inf }
 0x4ba   :  { %453 = vmax.xlane.f32.xlu0 %v452_v59 }
 0x4d0   :  { %637 = vperm.xlu0 %940, %v635_v60  }
 0x547   :  { %v454_v61 = vpop.xlane.xlu0 %453 }
 0x548   :  { %v455_v62 = vsub.f32 %v451_v58, %v454_v61  ;;  %v532_v11 = vadd.f32 %v531_v8, %v454_v61 }
 0x54a   :  { %v456_v63 = vmul.f32 1.442695, %v455_v62  ;;  %v883_v62 = vld [vmem:[%s1146_s4] ss:$0 sm:$0xff] }
 0x54c   :  { %954 = vpow2.f32 %v456_v63 }
 0x54f   :  { %v638_v28 = vpop.permute.xlu0 %637 }
 0x550   :  { %vm639_vm12 = vcmp.eq.s32.totalorder %v638_v28, 1 }
 0x556   :  { %v955_v0 = vpop.eup %954 }
 0x557   :  { %917 = vmatmul.mubr.msk.f32.vlgmr.msra.gmra.mrb[2].mxu1 %vm43_vm0, %v955_v0 }
 0x558   :  { %925 = vmatpush3.msra.mxu1 %v1051_v3  ;;  %926 = vmatprep.mubr.msk.f32.mxu1 %vm1002_vm1, %v1001_v4 }
 0x62a   :  { %v527_v1 = vpop.f32.mrb[2].mxu1 }
 0x62b   :  { %956 = vlog2.f32 %v527_v1  ;;  %v918_v2 = vpop.f32.mrb[3].mxu1 }
 0x635   :  { %v957_v9 = vpop.eup %956 }
 0x636   :  { %v534_v12 = vmul.f32 0.6931472, %v957_v9 }
 0x638   :  { %v535_v13 = vadd.f32 %v534_v12, %v532_v11 }
 0x63a   :  { %v543_v14 = vsel %vm542_vm10, %v535_v13, %v451_v58 }
 0x63b   :  { %544 = vst.msk [vmem:[#allocation2] sm:$0xff] %vm43_vm0, %v543_v14 }
 0x642   :  { %v548_v15 = vld [vmem:[#allocation2] sm:$0xff] }
 0x643   :  { %v549_v17 = vsel %vm43_vm0, %v548_v15, -inf }
 0x644   :  { %550 = vmax.xlane.f32.xlu1 %v549_v17 }
 0x655   :  { %734 = vperm.xlu1 %941, %v732_v18  }
 0x6d1   :  { %v551_v19 = vpop.xlane.xlu1 %550 }
 0x6d2   :  { %v552_v20 = vsub.f32 %v548_v15, %v551_v19  ;;  %v629_v29 = vadd.f32 %v628_v26, %v551_v19 }
 0x6d4   :  { %v553_v21 = vmul.f32 1.442695, %v552_v20 }
 0x6d5   :  { %v735_v43 = vpop.permute.xlu1 %734 }
 0x6d6   :  { %958 = vpow2.f32 %v553_v21  ;;  %vm736_vm14 = vcmp.eq.s32.totalorder %v735_v43, 1 }
 0x6e0   :  { %v959_v22 = vpop.eup %958 }
 0x6e1   :  { %922 = vmatmul.mubr.msk.f32.vlgmr.msra.gmra.mrb[4].mxu0 %vm43_vm0, %v959_v22 }
 0x6e2   :  { %930 = vmatpush3.msra.mxu0 %v1051_v3  ;;  %931 = vmatprep.mubr.msk.f32.mxu0 %vm1002_vm1, %v1001_v4  ;;  %v829_v4 = vsel %vm882_vm13, 1, %v1003_v6  ;;  %vm860_vm1 = vcmask 7168  }
 0x7b4   :  { %v624_v23 = vpop.f32.mrb[4].mxu0 }
 0x7b5   :  { %960 = vlog2.f32 %v624_v23  ;;  %v923_v24 = vpop.f32.mrb[5].mxu0 }
 0x7bf   :  { %v961_v27 = vpop.eup %960 }
 0x7c0   :  { %v631_v30 = vmul.f32 0.6931472, %v961_v27 }
 0x7c2   :  { %v632_v31 = vadd.f32 %v631_v30, %v629_v29 }
 0x7c4   :  { %v640_v32 = vsel %vm639_vm12, %v632_v31, %v548_v15 }
 0x7c5   :  { %641 = vst.msk [vmem:[#allocation2] sm:$0xff] %vm43_vm0, %v640_v32 }
 0x7cc   :  { %v645_v33 = vld [vmem:[#allocation2] sm:$0xff] }
 0x7cd   :  { %v646_v3 = vsel %vm43_vm0, %v645_v33, -inf }
 0x7ce   :  { %647 = vmax.xlane.f32.xlu0 %v646_v3 }
 0x7e4   :  { %831 = vperm.xlu0 %940, %v829_v4  }
 0x85b   :  { %v648_v34 = vpop.xlane.xlu0 %647 }
 0x85c   :  { %v649_v35 = vsub.f32 %v645_v33, %v648_v34  ;;  %v726_v44 = vadd.f32 %v725_v41, %v648_v34 }
 0x85e   :  { %v650_v36 = vmul.f32 1.442695, %v649_v35 }
 0x860   :  { %962 = vpow2.f32 %v650_v36 }
 0x863   :  { %v832_v57 = vpop.permute.xlu0 %831 }
 0x864   :  { %vm833_vm15 = vcmp.eq.s32.totalorder %v832_v57, 1 }
 0x86a   :  { %v963_v37 = vpop.eup %962 }
 0x86b   :  { %927 = vmatmul.mubr.msk.f32.vlgmr.msra.gmra.mrb[4].mxu1 %vm43_vm0, %v963_v37 }
 0x93e   :  { %v721_v38 = vpop.f32.mrb[4].mxu1 }
 0x93f   :  { %964 = vlog2.f32 %v721_v38  ;;  %v928_v39 = vpop.f32.mrb[5].mxu1 }
 0x949   :  { %v965_v42 = vpop.eup %964 }
 0x94a   :  { %v728_v5 = vmul.f32 0.6931472, %v965_v42 }
 0x94c   :  { %v729_v45 = vadd.f32 %v728_v5, %v726_v44 }
 0x94e   :  { %v737_v6 = vsel %vm736_vm14, %v729_v45, %v645_v33 }
 0x94f   :  { %738 = vst.msk [vmem:[#allocation2] sm:$0xff] %vm43_vm0, %v737_v6 }
 0x956   :  { %v742_v46 = vld [vmem:[#allocation2] sm:$0xff] }
 0x957   :  { %v743_v47 = vsel %vm43_vm0, %v742_v46, -inf }
 0x958   :  { %744 = vmax.xlane.f32.xlu1 %v743_v47 }
 0x9e5   :  { %v745_v48 = vpop.xlane.xlu1 %744 }
 0x9e6   :  { %v746_v49 = vsub.f32 %v742_v46, %v745_v48  ;;  %v823_v58 = vadd.f32 %v822_v55, %v745_v48 }
 0x9e8   :  { %v747_v50 = vmul.f32 1.442695, %v746_v49 }
 0x9ea   :  { %966 = vpow2.f32 %v747_v50 }
 0x9f4   :  { %v967_v51 = vpop.eup %966 }
 0x9f5   :  { %932 = vmatmul.mubr.msk.f32.vlgmr.msra.gmra.mrb[6].mxu0 %vm43_vm0, %v967_v51 }
 0xac8   :  { %v818_v52 = vpop.f32.mrb[6].mxu0 }
 0xac9   :  { %968 = vlog2.f32 %v818_v52  ;;  %v933_v53 = vpop.f32.mrb[7].mxu0 }
 0xad3   :  { %v969_v56 = vpop.eup %968 }
 0xad4   :  { %v825_v59 = vmul.f32 0.6931472, %v969_v56 }
 0xad6   :  { %v826_v60 = vadd.f32 %v825_v59, %v823_v58 }
 0xad8   :  { %v834_v61 = vsel %vm833_vm15, %v826_v60, %v742_v46 }
 0xad9   :  { %835 = vst.msk [vmem:[#allocation2] sm:$0xff] %vm43_vm0, %v834_v61 }
 0xae0   :  { %v839_v63 = vld [vmem:[#allocation2] sm:$0xff] }
 0xae1   :  { %v847_v0 = vadd.f32 %v883_v62, %v839_v63 }
 0xae3   :  { %v848_v1 = vsel %vm43_vm0, %v847_v0, -inf }
 0xae4   :  { %849 = vmax.xlane.f32.xlu0 %v848_v1 }
 0xb71   :  { %v850_v2 = vpop.xlane.xlu0 %849 }
 0xb72   :  { %v851_v16 = vsub.f32 %v847_v0, %v850_v2 }
 0xb74   :  { %v852_v7 = vmul.f32 1.442695, %v851_v16 }
 0xb76   :  { %970 = vpow2.f32 %v852_v7 }
 0xb80   :  { %v971_v8 = vpop.eup %970 }
 0xb81   :  { %v854_v9 = vsel %vm43_vm0, %v971_v8, 0.0 }
 0xb82   :  { %855 = vadd.xlane.f32.xlu1 %v854_v9 }
 0xc0f   :  { %v856_v10 = vpop.xlane.xlu1 %855 }
 0xc10   :  { %972 = vlog2.f32 %v856_v10 }
 0xc1a   :  { %v973_v11 = vpop.eup %972 }
 0xc1b   :  { %v858_v12 = vmul.f32 0.6931472, %v973_v11 }
 0xc1d   :  { %v859_v13 = vadd.f32 %v858_v12, %v850_v2 }
 0xc1f   :  { %861 = vst.msk [vmem:[%s1147_s5] sm:$0xff] %vm860_vm1, %v859_v13 }
 0xc20   :  { %866 = vsyncpa [#allocation4], 1 }

</bundles_post_ra>
